<compile_context>
chip_gen: v7x
topology: tpu7x:2x2x1
jax: 0.10.0
libtpu: 0.0.40
codegen_flags: <defaults>
</compile_context>

<pallas_src>
import functools
import numpy as np
import jax
import jax.numpy as jnp
from jax.experimental import pallas as pl
from jax.experimental.pallas import tpu as pltpu

NT = 4  # "nt" hardcoded in Downsampler.forward


# --------------------------------------------------------------------------
# Constant-operator construction (exact math folding, host-side numpy).
# --------------------------------------------------------------------------
_K1D = np.array([0.5, 1.0, 0.5], dtype=np.float64)  # separable factor of the 3x3 kernel


def _round_up(x, m):
    return (x + m - 1) // m * m


def _conv_level_matrix(n):
    """1D matrix for one level of 3-tap stride-2 pad-1 conv, with the
    ones-mask normalization folded in (row-normalized by valid-weight sum)."""
    n_out = (n - 1) // 2 + 1
    A = np.zeros((n_out, n), dtype=np.float64)
    for i in range(n_out):
        for d in range(3):
            j = 2 * i - 1 + d
            if 0 <= j < n:
                A[i, j] += _K1D[d]
    return A / A.sum(axis=1, keepdims=True)


def _interp_matrix(n_in, n_out):
    """1D linear-interpolation matrix, align_corners=True."""
    M = np.zeros((n_out, n_in), dtype=np.float64)
    if n_out == 1:
        M[0, 0] = 1.0
        return M
    for i in range(n_out):
        src = i * (n_in - 1) / (n_out - 1)
        j0 = int(np.floor(src))
        j1 = min(j0 + 1, n_in - 1)
        frac = src - j0
        M[i, j0] += 1.0 - frac
        M[i, j1] += frac
    return M


def _spatial_chain_matrix(n, n_levels, sz):
    M = np.eye(n, dtype=np.float64)
    cur = n
    for _ in range(n_levels):
        A = _conv_level_matrix(cur)
        M = A @ M
        cur = A.shape[0]
    return (_interp_matrix(cur, sz) @ M).astype(np.float64)  # (sz, n)


def _temporal_matrix(ntau, nt=NT):
    stride = ntau // (nt + 1)
    delta = stride // 2
    T = np.zeros((nt, ntau), dtype=np.float64)
    for n in range(nt):
        T[n, delta + n * stride: delta + (n + 1) * stride] = 1.0 / stride
    return T


def _vmem_capacity_bytes():
    try:
        cap = int(pltpu.get_tpu_info().vmem_capacity_bytes)
        if cap > 0:
            return cap
    except Exception:
        pass
    return 64 * 1024 * 1024  # conservative default (v7x per-core VMEM)


def _pick_k_tile(kdim, cap):
    """Largest K tile that (a) exactly covers K (divides kdim or equals it) and
    (b) is 128-lane aligned (unless it equals kdim) and (c) fits `cap` cols."""
    cap = max(128, cap)
    if kdim <= cap:
        return kdim
    if kdim % 128 != 0:
        # No 128-aligned tile can cover K exactly -> fall back to full K.
        return kdim
    base = kdim // 128
    dmax = min(cap // 128, base)
    for d in range(dmax, 0, -1):
        if base % d == 0:
            return d * 128
    return kdim


# --------------------------------------------------------------------------
# Pallas kernel: (BC_TILE, K_TILE) @ (K_TILE, N_pad), K-reduction accumulated
# directly into the f32 output block (resident across the last grid axis).
# --------------------------------------------------------------------------
def _downsampler_kernel(x_ref, op_ref, o_ref, *, k_tile, n_k, op_resident):
    k = pl.program_id(1)

    @pl.when(k == 0)
    def _():
        o_ref[...] = jnp.zeros_like(o_ref)

    if op_resident and n_k > 1:
        start = pl.multiple_of(k * k_tile, k_tile)
        op_blk = op_ref[pl.ds(start, k_tile), :]
    else:
        op_blk = op_ref[...]

    o_ref[...] += jnp.dot(x_ref[...], op_blk, preferred_element_type=jnp.float32)


def downsampler_forward(X, sz, compute_dtype=jnp.float32):
    """X: (B, C, T, H, W) float32 -> (B, C * nt * sz * sz) float32."""
    B, C, T, H, W = X.shape
    if T not in (5, 6, 10, 12, 20, 40, 80):
        raise NotImplementedError('X.shape[2] must be 10 x a power of 2')
    # TODO(synk): tuple-input path (ny > 1, per-frame Y alignment) not implemented.

    # number of conv/downsample levels, driven by the last spatial dim (as in PyTorch)
    n_levels, cur = 0, W
    while sz < cur / 2:
        cur = (cur - 1) // 2 + 1
        n_levels += 1

    Mh = _spatial_chain_matrix(H, n_levels, sz)          # (sz, H)
    Mw = _spatial_chain_matrix(W, n_levels, sz)          # (sz, W)
    Tm = _temporal_matrix(T, NT)                         # (nt, T)
    # TODO(synk): for very large T*H*W*sz^2 switch to the separable (Mw, Mh, Tm)
    # three-GEMM factorization instead of this dense kron operator.
    Kop = np.kron(Tm, np.kron(Mh, Mw)).T                 # (T*H*W, NT*sz*sz)

    BC = B * C
    Kdim = T * H * W
    N = NT * sz * sz
    N_pad = _round_up(N, 128)                            # lane-dense output block

    Kop_pad = np.zeros((Kdim, N_pad), dtype=np.float64)
    Kop_pad[:, :N] = Kop

    # ---- generation-aware tile sizing --------------------------------------
    vmem_cap = _vmem_capacity_bytes()
    vmem_limit = max(32 * 1024 * 1024,
                     min(int(vmem_cap * 0.70), 96 * 1024 * 1024))
    budget = int(vmem_limit * 0.80)
    x_item = np.dtype(compute_dtype).itemsize

    if BC >= 16:
        # >=2 BC tiles so both v7x TensorCores get work; 128-row tiles when big.
        n_tiles = max(2, pl.cdiv(BC, 512))
        align = 128 if BC >= 256 else 8
        BC_TILE = min(_round_up(pl.cdiv(BC, n_tiles), align), 512)
    else:
        BC_TILE = _round_up(BC, 8)

    def _footprint(bc_tile):
        out_b = 2 * bc_tile * N_pad * 4                      # double-buffered out
        op_full = 2 * Kdim * N_pad * x_item                  # resident operator
        resident = op_full <= budget // 2
        fixed = out_b + (op_full if resident else 0)
        per128 = 2 * bc_tile * 128 * x_item + (0 if resident
                                               else 2 * 128 * N_pad * x_item)
        return resident, fixed, per128

    op_resident, fixed, per128 = _footprint(BC_TILE)
    while BC_TILE > 8 and budget - fixed < per128:
        BC_TILE = max(8, _round_up(BC_TILE // 2, 8))
        op_resident, fixed, per128 = _footprint(BC_TILE)

    k_cap = max(128, ((budget - fixed) // max(per128, 1)) * 128)
    K_TILE = _pick_k_tile(Kdim, k_cap)
    n_k = Kdim // K_TILE
    n_bc = pl.cdiv(BC, BC_TILE)

    # ---- lane-dense layout, no host-side padding of X ----------------------
    Xf = X.reshape(BC, Kdim).astype(compute_dtype)
    Kop_j = jnp.asarray(Kop_pad, dtype=compute_dtype)

    if op_resident:
        # fetched once (block index constant), sliced in-kernel per K step
        op_spec = pl.BlockSpec((Kdim, N_pad), lambda i, k: (0, 0))
    else:
        op_spec = pl.BlockSpec((K_TILE, N_pad), lambda i, k: (k, 0))

    kernel = functools.partial(_downsampler_kernel, k_tile=K_TILE, n_k=n_k,
                               op_resident=op_resident)

    out = pl.pallas_call(
        kernel,
        out_shape=jax.ShapeDtypeStruct((BC, N_pad), jnp.float32),
        grid_spec=pltpu.PrefetchScalarGridSpec(
            num_scalar_prefetch=0,
            grid=(n_bc, n_k),
            in_specs=[
                pl.BlockSpec((BC_TILE, K_TILE), lambda i, k: (i, k)),
                op_spec,
            ],
            out_specs=pl.BlockSpec((BC_TILE, N_pad), lambda i, k: (i, 0)),
        ),
        compiler_params=pltpu.CompilerParams(
            dimension_semantics=("parallel", "arbitrary"),
            vmem_limit_bytes=vmem_limit,
        ),
    )(Xf, Kop_j)

    if N_pad != N:
        out = out[:, :N]
    return out.reshape(B, C * N)


# --------------------------------------------------------------------------
# Independent numpy reference (literal translation of the PyTorch code).
# --------------------------------------------------------------------------
def np_reference_forward(X, sz):
    X = np.asarray(X, dtype=np.float64)
    B, C, ntau, H, W = X.shape
    nt = NT
    stride = ntau // (nt + 1)
    delta = stride // 2
    k2 = np.outer(_K1D, _K1D)

    def conv2d_s2_p1(img):
        h, w = img.shape
        pad = np.pad(img, 1)
        ho, wo = (h - 1) // 2 + 1, (w - 1) // 2 + 1
        out = np.zeros((ho, wo))
        for i in range(ho):
            for j in range(wo):
                out[i, j] = np.sum(pad[2 * i:2 * i + 3, 2 * j:2 * j + 3] * k2)
        return out

    Xc = X
    while sz < Xc.shape[-1] / 2:
        h, w = Xc.shape[-2:]
        mask = conv2d_s2_p1(np.ones((h, w)))
        ho, wo = mask.shape
        Y = np.zeros((B, C, ntau, ho, wo))
        for b in range(B):
            for c in range(C):
                for t in range(ntau):
                    Y[b, c, t] = conv2d_s2_p1(Xc[b, c, t]) / mask
        Xc = Y

    h, w = Xc.shape[-2:]

    def coords(n_in, n_out):
        if n_out == 1:
            return np.zeros(1)
        return np.arange(n_out) * (n_in - 1) / (n_out - 1)

    ys, xs = coords(h, sz), coords(w, sz)
    out = np.zeros((B, C, ntau, sz, sz))
    for i in range(sz):
        y0 = int(np.floor(ys[i])); y1 = min(y0 + 1, h - 1); fy = ys[i] - y0
        for j in range(sz):
            x0 = int(np.floor(xs[j])); x1 = min(x0 + 1, w - 1); fx = xs[j] - x0
            out[..., i, j] = ((1 - fy) * (1 - fx) * Xc[..., y0, x0]
                              + (1 - fy) * fx * Xc[..., y0, x1]
                              + fy * (1 - fx) * Xc[..., y1, x0]
                              + fy * fx * Xc[..., y1, x1])

    slc = out[:, :, delta:delta + nt * stride]
    pooled = slc.reshape(B, C, nt, stride, sz, sz).mean(3)
    return pooled.reshape(B, -1)


if __name__ == "__main__":
    key = jax.random.PRNGKey(0)
    B, C, T, H, W = 2, 4, 10, 16, 16   # T must be in (5,6,10,12,20,40,80)
    sz = 4
    X = jax.random.normal(key, (B, C, T, H, W), dtype=jnp.float32)

    out = downsampler_forward(X, sz)
    out = jax.block_until_ready(out)

    ref = np_reference_forward(np.asarray(X), sz)
    assert out.shape == (B, C * NT * sz * sz), out.shape
    np.testing.assert_allclose(np.asarray(out), ref, rtol=2e-4, atol=2e-4)
    print("KERNEL_OK")
</pallas_src>

<mosaic_0001>
module attributes {stable_mosaic.version = 11 : i64} {
  func.func @_downsampler_kernel(%arg0: i32, %arg1: i32, %arg2: memref<8x2560xf32, #tpu.memory_space<vmem>>, %arg3: memref<2560x128xf32, #tpu.memory_space<vmem>>, %arg4: memref<8x128xf32, #tpu.memory_space<vmem>>) attributes {dimension_semantics = [#tpu.dimension_semantics<parallel>, #tpu.dimension_semantics<arbitrary>], iteration_bounds = array<i64: 1, 1>, scalar_prefetch = 0 : i64, scratch_operands = 0 : i64, tpu.core_type = #tpu.core_type<tc>, window_params = [{transform_indices = @transform_0, window_bounds = array<i64: 8, 2560>}, {pipeline_mode = #tpu.pipeline_mode<synchronous>, transform_indices = @transform_1, window_bounds = array<i64: 2560, 128>}, {transform_indices = @transform_2, window_bounds = array<i64: 8, 128>}]} {
    %c0_i32 = arith.constant 0 : i32
    %0 = arith.cmpi eq, %arg1, %c0_i32 : i32
    %1 = arith.extui %0 : i1 to i32
    %c0_i32_0 = arith.constant 0 : i32
    %2 = arith.cmpi ne, %1, %c0_i32_0 : i32
    scf.if %2 {
      %cst_8 = arith.constant 0.000000e+00 : f32
      %9 = vector.broadcast %cst_8 : f32 to vector<8x128xf32>
      %c0_9 = arith.constant 0 : index
      %c0_10 = arith.constant 0 : index
      %10 = vector.load %arg4[%c0_9, %c0_10] : memref<8x128xf32, #tpu.memory_space<vmem>>, vector<8x128xf32>
      tpu.vector_store %arg4[%c0_9, %c0_10], %9 {strides = array<i32>} : memref<8x128xf32, #tpu.memory_space<vmem>>, vector<8x128xf32>,
    } else {
    }
    %c0 = arith.constant 0 : index
    %c0_1 = arith.constant 0 : index
    %3 = vector.load %arg3[%c0, %c0_1] : memref<2560x128xf32, #tpu.memory_space<vmem>>, vector<2560x128xf32>
    %c0_2 = arith.constant 0 : index
    %c0_3 = arith.constant 0 : index
    %4 = vector.load %arg4[%c0_2, %c0_3] : memref<8x128xf32, #tpu.memory_space<vmem>>, vector<8x128xf32>
    %c0_4 = arith.constant 0 : index
    %c0_5 = arith.constant 0 : index
    %5 = vector.load %arg2[%c0_4, %c0_5] : memref<8x2560xf32, #tpu.memory_space<vmem>>, vector<8x2560xf32>
    %cst = arith.constant dense<0.000000e+00> : vector<8x128xf32>
    %6 = tpu.matmul %5, %3, %cst {dimension_numbers = #tpu.dot_dimension_numbers<[1], [0], [0], [1], [0, 0, 1, 1], [], []>} : vector<8x2560xf32>, vector<2560x128xf32>, vector<8x128xf32> -> vector<8x128xf32>
    %7 = arith.addf %4, %6 : vector<8x128xf32>
    %c0_6 = arith.constant 0 : index
    %c0_7 = arith.constant 0 : index
    %8 = vector.load %arg4[%c0_6, %c0_7] : memref<8x128xf32, #tpu.memory_space<vmem>>, vector<8x128xf32>
    tpu.vector_store %arg4[%c0_6, %c0_7], %7 {strides = array<i32>} : memref<8x128xf32, #tpu.memory_space<vmem>>, vector<8x128xf32>,
    return
  }
  func.func @transform_0(%arg0: i32, %arg1: i32) -> (i32, i32) {
    %c0_i32 = arith.constant 0 : i32
    return %arg0, %arg1 : i32, i32
  }
  func.func @transform_1(%arg0: i32, %arg1: i32) -> (i32, i32) {
    %c0_i32 = arith.constant 0 : i32
    %c0_i32_0 = arith.constant 0 : i32
    %c0_i32_1 = arith.constant 0 : i32
    return %c0_i32, %c0_i32_0 : i32, i32
  }
  func.func @transform_2(%arg0: i32, %arg1: i32) -> (i32, i32) {
    %c0_i32 = arith.constant 0 : i32
    %c0_i32_0 = arith.constant 0 : i32
    return %arg0, %c0_i32 : i32, i32
  }
}

</mosaic_0001>

<bundles_post_ra>
// kernel: tpu_custom_call.1
= control target key start
LH: loop header
LB: loop body
LE: loop exit
PB: predicated region body
PF: predicated region fallthrough
CT: control target
= control target key end

     0   :  { %7 = vsyncpa [#allocation3], 0  ;;  %s1913_s0 = inlined_call_operand.hbm [shape: f32[8,2560], index: 0, kind: input, shape index: {}]   ;;  %s1914_s1 = inlined_call_operand.hbm [shape: f32[2560,128], index: 1, kind: input, shape index: {}]   ;;  %s1915_s2 = inlined_call_operand.hbm [shape: f32[8,128], index: 2, kind: output, shape index: {}]  }
   0x1   :  { %8 = vsyncpa [#allocation6], 0 }
   0x2   :  { %9 = vsyncpa [#allocation4], 0  ;;  %s1850_s9 = smov [#allocation2]   ;;  %s1851_s11 = smov [#allocation5]  }
   0x3   :  { %s16_s10 = sshll.u32 %s1850_s9, 4  ;;  %s25_s12 = sshll.u32 %s1851_s11, 4  ;;  %s17_s10 = int_to_ptr.vmem [resolvable:$true] %s16_s10  ;;  %s1870_s12 = int_to_ptr.vmem [resolvable:$true] %s25_s12 }
   0x4   :  { %s1778_s15 = scalar_lea.hbm %s1913_s0, 2560 }
   0x5   :  { %p1779_p0 = scmp.ne.s32.totalorder %s1913_s0, %s1778_s15  ;;  %p1782_p1 = scmp.lt.u32.totalorder %s1778_s15, %s1913_s0 }
   0x7   :  { %p1784_p2 = pnand %p1782_p1, %p1779_p0 }
   0x9   :  { %1787 = shalt.err (!%p1784_p2)
}
   0xa   :  { %s1788_s20 = scalar_lea.vmem %s17_s10, 2560  ;;  %p1793_p4 = scmp.lt.s32.totalorder %s17_s10, %s17_s10 }
   0xb   :  { %p1789_p3 = scmp.ne.s32.totalorder %s17_s10, %s1788_s20  ;;  %p1794_p5 = scmp.lt.s32.totalorder %s1788_s20, %s1788_s20 }
   0xd   :  { %p1795_p6 = por %p1794_p5, %p1793_p4 }
   0xf   :  { %p1796_p7 = pnand %p1795_p6, %p1789_p3 }
  0x11   :  { %1799 = shalt.err (!%p1796_p7)
}
  0x12   :  { %19 = dma.hbm_to_vmem [thread:$0]  %s1913_s0, 2560, %s17_s10, [#allocation3]  }
  0x13   :  { %s1800_s25 = scalar_lea.hbm %s1914_s1, 40960 }
  0x14   :  { %p1801_p8 = scmp.ne.s32.totalorder %s1914_s1, %s1800_s25  ;;  %p1804_p9 = scmp.lt.u32.totalorder %s1800_s25, %s1914_s1 }
  0x16   :  { %p1806_p10 = pnand %p1804_p9, %p1801_p8 }
  0x18   :  { %1809 = shalt.err (!%p1806_p10)
}
  0x19   :  { %s1810_s30 = scalar_lea.vmem %s1870_s12, 40960  ;;  %p1815_p12 = scmp.lt.s32.totalorder %s1870_s12, %s1870_s12 }
  0x1a   :  { %p1811_p11 = scmp.ne.s32.totalorder %s1870_s12, %s1810_s30  ;;  %p1816_p13 = scmp.lt.s32.totalorder %s1810_s30, %s1810_s30 }
  0x1c   :  { %p1817_p0 = por %p1816_p13, %p1815_p12 }
  0x1e   :  { %p1818_p1 = pnand %p1817_p0, %p1811_p11 }
  0x20   :  { %1821 = shalt.err (!%p1818_p1)
}
  0x21   :  { %s1852_s0 = smov 128   ;;  %s1853_s3 = smov 8  }
  0x22   :  { %31 = dma.hbm_to_vmem [thread:$0]  %s1914_s1, 40960, %s1870_s12, [#allocation6], %s1852_s0, %s1852_s0, %s1853_s3  }
  0x23   :  { %1844 = dma.done.wait [#allocation3], 2560  }
  0x24   :  { %1845 = vsyncadd [#allocation3], 4294964736 }
  0x25   :  { %1846 = dma.done.wait [#allocation6], 40960  }
  0x26   :  { %1847 = vsyncadd [#allocation6], 4294926336  ;;  %v59_v0 = vld [vmem:[#allocation5 + $0x80] sm:$0xff]  ;;  %v60_v1 = vld [vmem:[#allocation5 + $0x88] sm:$0xff]  ;;  %s1854_s1 = smov [#allocation7]  }
  0x27   :  { %v91_v2 = vld [vmem:[#allocation5 + $0x180] sm:$0xff]  ;;  %v1452_v3 = vpack.c.bf16 %v60_v1, %v59_v0  ;;  %v92_v4 = vld [vmem:[#allocation5 + $0x188] sm:$0xff]  ;;  %v61_v11 = vld [vmem:[#allocation5 + $0x90] sm:$0xff]  ;;  %s1092_s6 = sshll.u32 %s1854_s1, 4  ;;  %s1093_s6 = int_to_ptr.vmem [resolvable:$true] %s1092_s6 }
  0x28   :  { %v43_v5 = vld [vmem:[#allocation5] sm:$0xff]  ;;  %v44_v6 = vld [vmem:[#allocation5 + $0x8] sm:$0xff]  ;;  %v1484_v7 = vpack.c.bf16 %v92_v4, %v91_v2  ;;  %v62_v13 = vld [vmem:[#allocation5 + $0x98] sm:$0xff]  ;;  %s1822_s7 = scalar_lea.vmem %s1093_s6, 128  ;;  %p1827_p3 = scmp.lt.s32.totalorder %s1093_s6, %s1093_s6 }
  0x29   :  { %v1454_v8 = vpack.c.bf16 %v44_v6, %v43_v5  ;;  %v75_v9 = vld [vmem:[#allocation5 + $0x100] sm:$0xff]  ;;  %v76_v10 = vld [vmem:[#allocation5 + $0x108] sm:$0xff]  ;;  %1453 = vmatprep.subr.bf16.mxu0 %v1452_v3  ;;  %v93_v14 = vld [vmem:[#allocation5 + $0x190] sm:$0xff]  ;;  %v1456_v16 = vpack.c.bf16 %v62_v13, %v61_v11  ;;  %p1823_p2 = scmp.ne.s32.totalorder %s1093_s6, %s1822_s7  ;;  %p1828_p4 = scmp.lt.s32.totalorder %s1822_s7, %s1822_s7 }
  0x2a   :  { %v1486_v12 = vpack.c.bf16 %v76_v10, %v75_v9  ;;  %v94_v15 = vld [vmem:[#allocation5 + $0x198] sm:$0xff]  ;;  %1485 = vmatprep.subr.bf16.mxu1 %v1484_v7  ;;  %v45_v18 = vld [vmem:[#allocation5 + $0x10] sm:$0xff]  ;;  %v63_v23 = vld [vmem:[#allocation5 + $0xa0] sm:$0xff] }
  0x2b   :  { %1455 = vmatpush3.bf16.msra.mxu0 %v1454_v8  ;;  %v1488_v17 = vpack.c.bf16 %v94_v15, %v93_v14  ;;  %v46_v19 = vld [vmem:[#allocation5 + $0x18] sm:$0xff]  ;;  %v77_v20 = vld [vmem:[#allocation5 + $0x110] sm:$0xff]  ;;  %v64_v24 = vld [vmem:[#allocation5 + $0xa8] sm:$0xff]  ;;  %p1829_p5 = por %p1828_p4, %p1827_p3 }
  0x2c   :  { %1487 = vmatpush3.bf16.msra.mxu1 %v1486_v12  ;;  %v1458_v21 = vpack.c.bf16 %v46_v19, %v45_v18  ;;  %v78_v22 = vld [vmem:[#allocation5 + $0x118] sm:$0xff]  ;;  %1457 = vmatprep.subr.bf16.mxu0 %v1456_v16  ;;  %v1460_v26 = vpack.c.bf16 %v64_v24, %v63_v23  ;;  %v95_v27 = vld [vmem:[#allocation5 + $0x1a0] sm:$0xff]  ;;  %v96_v28 = vld [vmem:[#allocation5 + $0x1a8] sm:$0xff] }
  0x2d   :  { %1489 = vmatprep.subr.bf16.mxu1 %v1488_v17  ;;  %v1490_v25 = vpack.c.bf16 %v78_v22, %v77_v20  ;;  %v47_v29 = vld [vmem:[#allocation5 + $0x20] sm:$0xff]  ;;  %v1492_v30 = vpack.c.bf16 %v96_v28, %v95_v27  ;;  %v48_v31 = vld [vmem:[#allocation5 + $0x28] sm:$0xff]  ;;  %v65_v35 = vld [vmem:[#allocation5 + $0xb0] sm:$0xff]  ;;  %p1830_p6 = pnand %p1829_p5, %p1823_p2 }
  0x2e   :  { %v79_v32 = vld [vmem:[#allocation5 + $0x120] sm:$0xff]  ;;  %v80_v33 = vld [vmem:[#allocation5 + $0x128] sm:$0xff]  ;;  %v1462_v34 = vpack.c.bf16 %v48_v31, %v47_v29  ;;  %v66_v36 = vld [vmem:[#allocation5 + $0xb8] sm:$0xff] }
  0x2f   :  { %1459 = vmatpush3.bf16.msra.mxu0 %v1458_v21  ;;  %v97_v37 = vld [vmem:[#allocation5 + $0x1b0] sm:$0xff]  ;;  %v1494_v38 = vpack.c.bf16 %v80_v33, %v79_v32  ;;  %v1464_v39 = vpack.c.bf16 %v66_v36, %v65_v35  ;;  %v98_v40 = vld [vmem:[#allocation5 + $0x1b8] sm:$0xff]  ;;  %v67_v46 = vld [vmem:[#allocation5 + $0xc0] sm:$0xff] }
  0x30   :  { %1491 = vmatpush3.bf16.msra.mxu1 %v1490_v25  ;;  %1461 = vmatprep.subr.bf16.mxu0 %v1460_v26  ;;  %v49_v41 = vld [vmem:[#allocation5 + $0x30] sm:$0xff]  ;;  %v50_v42 = vld [vmem:[#allocation5 + $0x38] sm:$0xff]  ;;  %v1496_v43 = vpack.c.bf16 %v98_v40, %v97_v37  ;;  %v68_v47 = vld [vmem:[#allocation5 + $0xc8] sm:$0xff] }
  0x31   :  { %1493 = vmatprep.subr.bf16.mxu1 %v1492_v30  ;;  %v81_v44 = vld [vmem:[#allocation5 + $0x130] sm:$0xff]  ;;  %v82_v45 = vld [vmem:[#allocation5 + $0x138] sm:$0xff]  ;;  %v99_v48 = vld [vmem:[#allocation5 + $0x1c0] sm:$0xff]  ;;  %v1466_v50 = vpack.c.bf16 %v50_v42, %v49_v41  ;;  %v1468_v52 = vpack.c.bf16 %v68_v47, %v67_v46 }
  0x32   :  { %v100_v49 = vld [vmem:[#allocation5 + $0x1c8] sm:$0xff]  ;;  %v1498_v51 = vpack.c.bf16 %v82_v45, %v81_v44  ;;  %v51_v53 = vld [vmem:[#allocation5 + $0x40] sm:$0xff]  ;;  %v69_v58 = vld [vmem:[#allocation5 + $0xd0] sm:$0xff] }
  0x33   :  { %1463 = vmatpush3.bf16.msra.mxu0 %v1462_v34  ;;  %v52_v54 = vld [vmem:[#allocation5 + $0x48] sm:$0xff]  ;;  %v83_v55 = vld [vmem:[#allocation5 + $0x140] sm:$0xff]  ;;  %v1500_v56 = vpack.c.bf16 %v100_v49, %v99_v48  ;;  %v70_v59 = vld [vmem:[#allocation5 + $0xd8] sm:$0xff] }
  0x34   :  { %1495 = vmatpush3.bf16.msra.mxu1 %v1494_v38  ;;  %1465 = vmatprep.subr.bf16.mxu0 %v1464_v39  ;;  %v84_v57 = vld [vmem:[#allocation5 + $0x148] sm:$0xff]  ;;  %v101_v60 = vld [vmem:[#allocation5 + $0x1d0] sm:$0xff]  ;;  %v102_v61 = vld [vmem:[#allocation5 + $0x1d8] sm:$0xff]  ;;  %v1470_v62 = vpack.c.bf16 %v52_v54, %v51_v53  ;;  %v1472_v0 = vpack.c.bf16 %v70_v59, %v69_v58 }
  0x35   :  { %1497 = vmatprep.subr.bf16.mxu1 %v1496_v43  ;;  %v1502_v63 = vpack.c.bf16 %v84_v57, %v83_v55  ;;  %v53_v1 = vld [vmem:[#allocation5 + $0x50] sm:$0xff]  ;;  %v54_v2 = vld [vmem:[#allocation5 + $0x58] sm:$0xff]  ;;  %v1504_v4 = vpack.c.bf16 %v102_v61, %v101_v60  ;;  %v71_v6 = vld [vmem:[#allocation5 + $0xe0] sm:$0xff] }
  0x36   :  { %v85_v3 = vld [vmem:[#allocation5 + $0x150] sm:$0xff]  ;;  %v86_v5 = vld [vmem:[#allocation5 + $0x158] sm:$0xff]  ;;  %v72_v7 = vld [vmem:[#allocation5 + $0xe8] sm:$0xff]  ;;  %v1474_v10 = vpack.c.bf16 %v54_v2, %v53_v1 }
  0x37   :  { %1467 = vmatpush3.bf16.msra.mxu0 %v1466_v50  ;;  %v103_v8 = vld [vmem:[#allocation5 + $0x1e0] sm:$0xff]  ;;  %v104_v9 = vld [vmem:[#allocation5 + $0x1e8] sm:$0xff]  ;;  %v1506_v13 = vpack.c.bf16 %v86_v5, %v85_v3  ;;  %v1476_v14 = vpack.c.bf16 %v72_v7, %v71_v6  ;;  %v367_v17 = vld [vmem:[#allocation2 + $0x18] sm:$0xff] }
  0x38   :  { %1499 = vmatpush3.bf16.msra.mxu1 %v1498_v51  ;;  %1469 = vmatprep.subr.bf16.mxu0 %v1468_v52  ;;  %v55_v11 = vld [vmem:[#allocation5 + $0x60] sm:$0xff]  ;;  %v56_v12 = vld [vmem:[#allocation5 + $0x68] sm:$0xff]  ;;  %v1508_v18 = vpack.c.bf16 %v104_v9, %v103_v8  ;;  %v73_v20 = vld [vmem:[#allocation5 + $0xf0] sm:$0xff] }
  0x39   :  { %1501 = vmatprep.subr.bf16.mxu1 %v1500_v56  ;;  %v87_v15 = vld [vmem:[#allocation5 + $0x160] sm:$0xff]  ;;  %v365_v16 = vld [vmem:[#allocation2 + $0x8] sm:$0xff]  ;;  %v74_v21 = vld [vmem:[#allocation5 + $0xf8] sm:$0xff]  ;;  %518 = vmatprep.mubr.f32.mxu1 %v367_v17  ;;  %v1478_v24 = vpack.c.bf16 %v56_v12, %v55_v11 }
  0x3a   :  { %v88_v19 = vld [vmem:[#allocation5 + $0x168] sm:$0xff]  ;;  %448 = vmatprep.mubr.f32.mxu0 %v365_v16  ;;  %v105_v22 = vld [vmem:[#allocation5 + $0x1f0] sm:$0xff]  ;;  %v106_v23 = vld [vmem:[#allocation5 + $0x1f8] sm:$0xff]  ;;  %v1480_v26 = vpack.c.bf16 %v74_v21, %v73_v20 }
  0x3b   :  { %1471 = vmatpush3.bf16.msra.mxu0 %v1470_v62  ;;  %v1510_v25 = vpack.c.bf16 %v88_v19, %v87_v15  ;;  %v57_v27 = vld [vmem:[#allocation5 + $0x70] sm:$0xff]  ;;  %v58_v28 = vld [vmem:[#allocation5 + $0x78] sm:$0xff]  ;;  %v1512_v30 = vpack.c.bf16 %v106_v23, %v105_v22  ;;  %v123_v32 = vld [vmem:[#allocation5 + $0x280] sm:$0xff] }
  0x3c   :  { %1503 = vmatpush3.bf16.msra.mxu1 %v1502_v63  ;;  %1473 = vmatprep.subr.bf16.mxu0 %v1472_v0  ;;  %v89_v29 = vld [vmem:[#allocation5 + $0x170] sm:$0xff]  ;;  %v90_v31 = vld [vmem:[#allocation5 + $0x178] sm:$0xff]  ;;  %v124_v33 = vld [vmem:[#allocation5 + $0x288] sm:$0xff]  ;;  %v1482_v36 = vpack.c.bf16 %v58_v28, %v57_v27 }
  0x3d   :  { %1505 = vmatprep.subr.bf16.mxu1 %v1504_v4  ;;  %v155_v34 = vld [vmem:[#allocation5 + $0x380] sm:$0xff]  ;;  %v156_v35 = vld [vmem:[#allocation5 + $0x388] sm:$0xff]  ;;  %v1514_v37 = vpack.c.bf16 %v90_v31, %v89_v29  ;;  %v1516_v38 = vpack.c.bf16 %v124_v33, %v123_v32  ;;  %v125_v44 = vld [vmem:[#allocation5 + $0x290] sm:$0xff] }
  0x3e   :  { %v107_v39 = vld [vmem:[#allocation5 + $0x200] sm:$0xff]  ;;  %v108_v40 = vld [vmem:[#allocation5 + $0x208] sm:$0xff]  ;;  %v1548_v42 = vpack.c.bf16 %v156_v35, %v155_v34  ;;  %v126_v45 = vld [vmem:[#allocation5 + $0x298] sm:$0xff] }
  0x3f   :  { %1475 = vmatpush3.bf16.msra.mxu0 %v1474_v10  ;;  %v139_v41 = vld [vmem:[#allocation5 + $0x300] sm:$0xff]  ;;  %v140_v43 = vld [vmem:[#allocation5 + $0x308] sm:$0xff]  ;;  %v157_v46 = vld [vmem:[#allocation5 + $0x390] sm:$0xff]  ;;  %v1518_v50 = vpack.c.bf16 %v108_v40, %v107_v39  ;;  %v1520_v52 = vpack.c.bf16 %v126_v45, %v125_v44 }
  0x40   :  { %1507 = vmatpush3.bf16.msra.mxu1 %v1506_v13  ;;  %1477 = vmatprep.subr.bf16.mxu0 %v1476_v14  ;;  %v158_v47 = vld [vmem:[#allocation5 + $0x398] sm:$0xff]  ;;  %v364_v48 = vld [vmem:[#allocation2] sm:$0xff]  ;;  %v366_v49 = vld [vmem:[#allocation2 + $0x10] sm:$0xff]  ;;  %v1550_v51 = vpack.c.bf16 %v140_v43, %v139_v41 }
  0x41   :  { %1509 = vmatprep.subr.bf16.mxu1 %v1508_v18  ;;  %v109_v53 = vld [vmem:[#allocation5 + $0x210] sm:$0xff]  ;;  %v110_v54 = vld [vmem:[#allocation5 + $0x218] sm:$0xff]  ;;  %v1552_v56 = vpack.c.bf16 %v158_v47, %v157_v46  ;;  %v127_v58 = vld [vmem:[#allocation5 + $0x2a0] sm:$0xff] }
  0x42   :  { %v141_v55 = vld [vmem:[#allocation5 + $0x310] sm:$0xff]  ;;  %v142_v57 = vld [vmem:[#allocation5 + $0x318] sm:$0xff]  ;;  %v128_v59 = vld [vmem:[#allocation5 + $0x2a8] sm:$0xff]  ;;  %v1522_v62 = vpack.c.bf16 %v110_v54, %v109_v53 }
  0x43   :  { %1479 = vmatpush3.bf16.msra.mxu0 %v1478_v24  ;;  %v159_v60 = vld [vmem:[#allocation5 + $0x3a0] sm:$0xff]  ;;  %v160_v61 = vld [vmem:[#allocation5 + $0x3a8] sm:$0xff]  ;;  %v1554_v63 = vpack.c.bf16 %v142_v57, %v141_v55  ;;  %v1524_v0 = vpack.c.bf16 %v128_v59, %v127_v58  ;;  %v129_v6 = vld [vmem:[#allocation5 + $0x2b0] sm:$0xff] }
  0x44   :  { %1511 = vmatpush3.bf16.msra.mxu1 %v1510_v25  ;;  %1481 = vmatprep.subr.bf16.mxu0 %v1480_v26  ;;  %v111_v1 = vld [vmem:[#allocation5 + $0x220] sm:$0xff]  ;;  %v112_v2 = vld [vmem:[#allocation5 + $0x228] sm:$0xff]  ;;  %v1556_v4 = vpack.c.bf16 %v160_v61, %v159_v60  ;;  %v130_v7 = vld [vmem:[#allocation5 + $0x2b8] sm:$0xff] }
  0x45   :  { %1513 = vmatprep.subr.bf16.mxu1 %v1512_v30  ;;  %v143_v3 = vld [vmem:[#allocation5 + $0x320] sm:$0xff]  ;;  %v144_v5 = vld [vmem:[#allocation5 + $0x328] sm:$0xff]  ;;  %v161_v8 = vld [vmem:[#allocation5 + $0x3b0] sm:$0xff]  ;;  %v1526_v10 = vpack.c.bf16 %v112_v2, %v111_v1  ;;  %v1528_v12 = vpack.c.bf16 %v130_v7, %v129_v6 }
  0x46   :  { %v162_v9 = vld [vmem:[#allocation5 + $0x3b8] sm:$0xff]  ;;  %v1558_v11 = vpack.c.bf16 %v144_v5, %v143_v3  ;;  %v113_v13 = vld [vmem:[#allocation5 + $0x230] sm:$0xff]  ;;  %v131_v18 = vld [vmem:[#allocation5 + $0x2c0] sm:$0xff] }
  0x47   :  { %1483 = vmatpush3.bf16.msra.mxu0 %v1482_v36  ;;  %v114_v14 = vld [vmem:[#allocation5 + $0x238] sm:$0xff]  ;;  %v145_v15 = vld [vmem:[#allocation5 + $0x330] sm:$0xff]  ;;  %v1560_v16 = vpack.c.bf16 %v162_v9, %v161_v8  ;;  %v132_v19 = vld [vmem:[#allocation5 + $0x2c8] sm:$0xff] }
  0x48   :  { %1515 = vmatpush3.bf16.msra.mxu1 %v1514_v37  ;;  %1517 = vmatprep.subr.bf16.mxu0 %v1516_v38  ;;  %v146_v17 = vld [vmem:[#allocation5 + $0x338] sm:$0xff]  ;;  %v163_v20 = vld [vmem:[#allocation5 + $0x3c0] sm:$0xff]  ;;  %v164_v21 = vld [vmem:[#allocation5 + $0x3c8] sm:$0xff]  ;;  %v1530_v22 = vpack.c.bf16 %v114_v14, %v113_v13  ;;  %v1532_v26 = vpack.c.bf16 %v132_v19, %v131_v18 }
  0x49   :  { %1549 = vmatprep.subr.bf16.mxu1 %v1548_v42  ;;  %v115_v23 = vld [vmem:[#allocation5 + $0x240] sm:$0xff]  ;;  %v369_v24 = vld [vmem:[#allocation2 + $0x28] sm:$0xff]  ;;  %v1562_v25 = vpack.c.bf16 %v146_v17, %v145_v15  ;;  %v371_v29 = vld [vmem:[#allocation2 + $0x38] sm:$0xff]  ;;  %v1564_v30 = vpack.c.bf16 %v164_v21, %v163_v20 }
  0x4a   :  { %449 = vmatmul.mubr.f32.vlgmr.msra.gmra.mrb[0].mxu0 %v364_v48  ;;  %v116_v27 = vld [vmem:[#allocation5 + $0x248] sm:$0xff]  ;;  %v147_v28 = vld [vmem:[#allocation5 + $0x340] sm:$0xff]  ;;  %v133_v32 = vld [vmem:[#allocation5 + $0x2d0] sm:$0xff] }
  0x4b   :  { %519 = vmatmul.mubr.f32.vlgmr.msra.gmra.mrb[0].mxu1 %v366_v49  ;;  %1519 = vmatpush3.bf16.msra.mxu0 %v1518_v50  ;;  %v148_v31 = vld [vmem:[#allocation5 + $0x348] sm:$0xff]  ;;  %v134_v33 = vld [vmem:[#allocation5 + $0x2d8] sm:$0xff]  ;;  %v165_v34 = vld [vmem:[#allocation5 + $0x3d0] sm:$0xff]  ;;  %v1534_v36 = vpack.c.bf16 %v116_v27, %v115_v23 }
  0x4c   :  { %1551 = vmatpush3.bf16.msra.mxu1 %v1550_v51  ;;  %1521 = vmatprep.subr.bf16.mxu0 %v1520_v52  ;;  %v166_v35 = vld [vmem:[#allocation5 + $0x3d8] sm:$0xff]  ;;  %v1566_v37 = vpack.c.bf16 %v148_v31, %v147_v28  ;;  %v1536_v38 = vpack.c.bf16 %v134_v33, %v133_v32  ;;  %v117_v39 = vld [vmem:[#allocation5 + $0x250] sm:$0xff]  ;;  %v135_v44 = vld [vmem:[#allocation5 + $0x2e0] sm:$0xff] }
  0x4d   :  { %1553 = vmatprep.subr.bf16.mxu1 %v1552_v56  ;;  %588 = vmatprep.mubr.f32.mxu0 %v369_v24  ;;  %v118_v40 = vld [vmem:[#allocation5 + $0x258] sm:$0xff]  ;;  %v149_v41 = vld [vmem:[#allocation5 + $0x350] sm:$0xff]  ;;  %v1568_v42 = vpack.c.bf16 %v166_v35, %v165_v34  ;;  %v136_v45 = vld [vmem:[#allocation5 + $0x2e8] sm:$0xff] }
  0x4e   :  { %658 = vmatprep.mubr.f32.mxu1 %v371_v29  ;;  %v150_v43 = vld [vmem:[#allocation5 + $0x358] sm:$0xff]  ;;  %v167_v46 = vld [vmem:[#allocation5 + $0x3e0] sm:$0xff]  ;;  %v168_v47 = vld [vmem:[#allocation5 + $0x3e8] sm:$0xff]  ;;  %v1538_v48 = vpack.c.bf16 %v118_v40, %v117_v39  ;;  %v1540_v50 = vpack.c.bf16 %v136_v45, %v135_v44 }
  0x4f   :  { %1523 = vmatpush3.bf16.msra.mxu0 %v1522_v62  ;;  %v1570_v49 = vpack.c.bf16 %v150_v43, %v149_v41  ;;  %v119_v51 = vld [vmem:[#allocation5 + $0x260] sm:$0xff]  ;;  %v120_v52 = vld [vmem:[#allocation5 + $0x268] sm:$0xff]  ;;  %v1572_v54 = vpack.c.bf16 %v168_v47, %v167_v46  ;;  %v137_v56 = vld [vmem:[#allocation5 + $0x2f0] sm:$0xff] }
  0x50   :  { %1555 = vmatpush3.bf16.msra.mxu1 %v1554_v63  ;;  %1525 = vmatprep.subr.bf16.mxu0 %v1524_v0  ;;  %v151_v53 = vld [vmem:[#allocation5 + $0x360] sm:$0xff]  ;;  %v152_v55 = vld [vmem:[#allocation5 + $0x368] sm:$0xff]  ;;  %v138_v57 = vld [vmem:[#allocation5 + $0x2f8] sm:$0xff]  ;;  %v1542_v60 = vpack.c.bf16 %v120_v52, %v119_v51 }
  0x51   :  { %1557 = vmatprep.subr.bf16.mxu1 %v1556_v4  ;;  %v169_v58 = vld [vmem:[#allocation5 + $0x3f0] sm:$0xff]  ;;  %v170_v59 = vld [vmem:[#allocation5 + $0x3f8] sm:$0xff]  ;;  %v1574_v61 = vpack.c.bf16 %v152_v55, %v151_v53  ;;  %v1544_v62 = vpack.c.bf16 %v138_v57, %v137_v56  ;;  %v187_v4 = vld [vmem:[#allocation5 + $0x480] sm:$0xff] }
  0x52   :  { %v121_v63 = vld [vmem:[#allocation5 + $0x270] sm:$0xff]  ;;  %v122_v0 = vld [vmem:[#allocation5 + $0x278] sm:$0xff]  ;;  %v1576_v2 = vpack.c.bf16 %v170_v59, %v169_v58  ;;  %v188_v5 = vld [vmem:[#allocation5 + $0x488] sm:$0xff] }
  0x53   :  { %1527 = vmatpush3.bf16.msra.mxu0 %v1526_v10  ;;  %v153_v1 = vld [vmem:[#allocation5 + $0x370] sm:$0xff]  ;;  %v154_v3 = vld [vmem:[#allocation5 + $0x378] sm:$0xff]  ;;  %v219_v6 = vld [vmem:[#allocation5 + $0x580] sm:$0xff]  ;;  %v1546_v8 = vpack.c.bf16 %v122_v0, %v121_v63  ;;  %v1580_v10 = vpack.c.bf16 %v188_v5, %v187_v4 }
  0x54   :  { %1559 = vmatpush3.bf16.msra.mxu1 %v1558_v11  ;;  %1529 = vmatprep.subr.bf16.mxu0 %v1528_v12  ;;  %v220_v7 = vld [vmem:[#allocation5 + $0x588] sm:$0xff]  ;;  %v1578_v9 = vpack.c.bf16 %v154_v3, %v153_v1  ;;  %v171_v11 = vld [vmem:[#allocation5 + $0x400] sm:$0xff]  ;;  %v190_v17 = vld [vmem:[#allocation5 + $0x498] sm:$0xff] }
  0x55   :  { %1561 = vmatprep.subr.bf16.mxu1 %v1560_v16  ;;  %v172_v12 = vld [vmem:[#allocation5 + $0x408] sm:$0xff]  ;;  %v203_v13 = vld [vmem:[#allocation5 + $0x500] sm:$0xff]  ;;  %v1612_v14 = vpack.c.bf16 %v220_v7, %v219_v6  ;;  %v189_v16 = vld [vmem:[#allocation5 + $0x490] sm:$0xff] }
  0x56   :  { %v204_v15 = vld [vmem:[#allocation5 + $0x508] sm:$0xff]  ;;  %v221_v18 = vld [vmem:[#allocation5 + $0x590] sm:$0xff]  ;;  %v222_v19 = vld [vmem:[#allocation5 + $0x598] sm:$0xff]  ;;  %v1582_v21 = vpack.c.bf16 %v172_v12, %v171_v11  ;;  %v1584_v24 = vpack.c.bf16 %v190_v17, %v189_v16 }
  0x57   :  { %1531 = vmatpush3.bf16.msra.mxu0 %v1530_v22  ;;  %v368_v20 = vld [vmem:[#allocation2 + $0x20] sm:$0xff]  ;;  %v370_v22 = vld [vmem:[#allocation2 + $0x30] sm:$0xff]  ;;  %v1614_v23 = vpack.c.bf16 %v204_v15, %v203_v13  ;;  %v1616_v28 = vpack.c.bf16 %v222_v19, %v221_v18  ;;  %v206_v29 = vld [vmem:[#allocation5 + $0x518] sm:$0xff] }
  0x58   :  { %1563 = vmatpush3.bf16.msra.mxu1 %v1562_v25  ;;  %1533 = vmatprep.subr.bf16.mxu0 %v1532_v26  ;;  %v173_v25 = vld [vmem:[#allocation5 + $0x410] sm:$0xff]  ;;  %v174_v26 = vld [vmem:[#allocation5 + $0x418] sm:$0xff]  ;;  %v192_v31 = vld [vmem:[#allocation5 + $0x4a8] sm:$0xff] }
  0x59   :  { %1565 = vmatprep.subr.bf16.mxu1 %v1564_v30  ;;  %v205_v27 = vld [vmem:[#allocation5 + $0x510] sm:$0xff]  ;;  %v191_v30 = vld [vmem:[#allocation5 + $0x4a0] sm:$0xff]  ;;  %v224_v33 = vld [vmem:[#allocation5 + $0x5a8] sm:$0xff]  ;;  %v1586_v35 = vpack.c.bf16 %v174_v26, %v173_v25 }
  0x5a   :  { %v223_v32 = vld [vmem:[#allocation5 + $0x5a0] sm:$0xff]  ;;  %v373_v34 = vld [vmem:[#allocation2 + $0x48] sm:$0xff]  ;;  %v193_v44 = vld [vmem:[#allocation5 + $0x4b0] sm:$0xff] }
  0x5b   :  { %1535 = vmatpush3.bf16.msra.mxu0 %v1534_v36  ;;  %v375_v36 = vld [vmem:[#allocation2 + $0x58] sm:$0xff]  ;;  %v175_v39 = vld [vmem:[#allocation5 + $0x420] sm:$0xff]  ;;  %v176_v40 = vld [vmem:[#allocation5 + $0x428] sm:$0xff] }
  0x5c   :  { %1567 = vmatpush3.bf16.msra.mxu1 %v1566_v37  ;;  %1537 = vmatprep.subr.bf16.mxu0 %v1536_v38  ;;  %v1618_v37 = vpack.c.bf16 %v206_v29, %v205_v27  ;;  %v1588_v38 = vpack.c.bf16 %v192_v31, %v191_v30  ;;  %v207_v41 = vld [vmem:[#allocation5 + $0x520] sm:$0xff]  ;;  %v208_v43 = vld [vmem:[#allocation5 + $0x528] sm:$0xff]  ;;  %v194_v45 = vld [vmem:[#allocation5 + $0x4b8] sm:$0xff] }
  0x5d   :  { %1569 = vmatprep.subr.bf16.mxu1 %v1568_v42  ;;  %v1620_v42 = vpack.c.bf16 %v224_v33, %v223_v32  ;;  %v225_v46 = vld [vmem:[#allocation5 + $0x5b0] sm:$0xff]  ;;  %v226_v47 = vld [vmem:[#allocation5 + $0x5b8] sm:$0xff]  ;;  %v195_v56 = vld [vmem:[#allocation5 + $0x4c0] sm:$0xff] }
  0x5e   :  { %v177_v51 = vld [vmem:[#allocation5 + $0x430] sm:$0xff]  ;;  %v178_v52 = vld [vmem:[#allocation5 + $0x438] sm:$0xff]  ;;  %v196_v57 = vld [vmem:[#allocation5 + $0x4c8] sm:$0xff] }
  0x5f   :  { %1539 = vmatpush3.bf16.msra.mxu0 %v1538_v48  ;;  %v1590_v48 = vpack.c.bf16 %v176_v40, %v175_v39  ;;  %v209_v53 = vld [vmem:[#allocation5 + $0x530] sm:$0xff]  ;;  %v210_v55 = vld [vmem:[#allocation5 + $0x538] sm:$0xff]  ;;  %v227_v58 = vld [vmem:[#allocation5 + $0x5c0] sm:$0xff] }
  0x60   :  { %1571 = vmatpush3.bf16.msra.mxu1 %v1570_v49  ;;  %1541 = vmatprep.subr.bf16.mxu0 %v1540_v50  ;;  %v1622_v49 = vpack.c.bf16 %v208_v43, %v207_v41  ;;  %v1592_v50 = vpack.c.bf16 %v194_v45, %v193_v44  ;;  %v228_v59 = vld [vmem:[#allocation5 + $0x5c8] sm:$0xff]  ;;  %v179_v63 = vld [vmem:[#allocation5 + $0x440] sm:$0xff]  ;;  %v197_v4 = vld [vmem:[#allocation5 + $0x4d0] sm:$0xff] }
  0x61   :  { %1573 = vmatprep.subr.bf16.mxu1 %v1572_v54  ;;  %v1624_v54 = vpack.c.bf16 %v226_v47, %v225_v46  ;;  %v180_v0 = vld [vmem:[#allocation5 + $0x448] sm:$0xff]  ;;  %v211_v1 = vld [vmem:[#allocation5 + $0x540] sm:$0xff]  ;;  %v198_v5 = vld [vmem:[#allocation5 + $0x4d8] sm:$0xff] }
  0x62   :  { %v212_v3 = vld [vmem:[#allocation5 + $0x548] sm:$0xff]  ;;  %v229_v6 = vld [vmem:[#allocation5 + $0x5d0] sm:$0xff]  ;;  %v230_v7 = vld [vmem:[#allocation5 + $0x5d8] sm:$0xff] }
  0x63   :  { %1543 = vmatpush3.bf16.msra.mxu0 %v1542_v60  ;;  %v1594_v60 = vpack.c.bf16 %v178_v52, %v177_v51  ;;  %v181_v11 = vld [vmem:[#allocation5 + $0x450] sm:$0xff]  ;;  %v182_v12 = vld [vmem:[#allocation5 + $0x458] sm:$0xff]  ;;  %v199_v16 = vld [vmem:[#allocation5 + $0x4e0] sm:$0xff] }
  0x64   :  { %1575 = vmatpush3.bf16.msra.mxu1 %v1574_v61  ;;  %1545 = vmatprep.subr.bf16.mxu0 %v1544_v62  ;;  %v1626_v61 = vpack.c.bf16 %v210_v55, %v209_v53  ;;  %v1596_v62 = vpack.c.bf16 %v196_v57, %v195_v56  ;;  %v213_v13 = vld [vmem:[#allocation5 + $0x550] sm:$0xff]  ;;  %v214_v15 = vld [vmem:[#allocation5 + $0x558] sm:$0xff]  ;;  %v200_v17 = vld [vmem:[#allocation5 + $0x4e8] sm:$0xff] }
  0x65   :  { %1577 = vmatprep.subr.bf16.mxu1 %v1576_v2  ;;  %v1628_v2 = vpack.c.bf16 %v228_v59, %v227_v58  ;;  %v231_v18 = vld [vmem:[#allocation5 + $0x5e0] sm:$0xff]  ;;  %v232_v19 = vld [vmem:[#allocation5 + $0x5e8] sm:$0xff]  ;;  %v202_v29 = vld [vmem:[#allocation5 + $0x4f8] sm:$0xff] }
  0x66   :  { %v215_v25 = vld [vmem:[#allocation5 + $0x560] sm:$0xff]  ;;  %v1636_v26 = vpack.c.bf16 %v232_v19, %v231_v18  ;;  %v216_v27 = vld [vmem:[#allocation5 + $0x568] sm:$0xff]  ;;  %v233_v30 = vld [vmem:[#allocation5 + $0x5f0] sm:$0xff] }
  0x67   :  { %1547 = vmatpush3.bf16.msra.mxu0 %v1546_v8  ;;  %v1598_v8 = vpack.c.bf16 %v180_v0, %v179_v63  ;;  %v234_v31 = vld [vmem:[#allocation5 + $0x5f8] sm:$0xff]  ;;  %v1638_v33 = vpack.c.bf16 %v216_v27, %v215_v25  ;;  %v251_v40 = vld [vmem:[#allocation5 + $0x680] sm:$0xff]  ;;  %v252_v41 = vld [vmem:[#allocation5 + $0x688] sm:$0xff] }
  0x68   :  { %1579 = vmatpush3.bf16.msra.mxu1 %v1578_v9  ;;  %1581 = vmatprep.subr.bf16.mxu0 %v1580_v10  ;;  %v1630_v9 = vpack.c.bf16 %v212_v3, %v211_v1  ;;  %v1600_v10 = vpack.c.bf16 %v198_v5, %v197_v4  ;;  %v218_v39 = vld [vmem:[#allocation5 + $0x578] sm:$0xff]  ;;  %v284_v43 = vld [vmem:[#allocation5 + $0x788] sm:$0xff]  ;;  %v1644_v46 = vpack.c.bf16 %v252_v41, %v251_v40  ;;  %v235_v47 = vld [vmem:[#allocation5 + $0x600] sm:$0xff] }
  0x69   :  { %1613 = vmatprep.subr.bf16.mxu1 %v1612_v14  ;;  %v1632_v14 = vpack.c.bf16 %v230_v7, %v229_v6  ;;  %v268_v51 = vld [vmem:[#allocation5 + $0x708] sm:$0xff]  ;;  %v253_v52 = vld [vmem:[#allocation5 + $0x690] sm:$0xff]  ;;  %v254_v53 = vld [vmem:[#allocation5 + $0x698] sm:$0xff] }
  0x6a   :  { %589 = vmatmul.mubr.f32.vlgmr.msra.gmra.mrb[2].mxu0 %v368_v20  ;;  %v1602_v20 = vpack.c.bf16 %v182_v12, %v181_v11  ;;  %v286_v55 = vld [vmem:[#allocation5 + $0x798] sm:$0xff]  ;;  %v372_v56 = vld [vmem:[#allocation2 + $0x40] sm:$0xff]  ;;  %v374_v58 = vld [vmem:[#allocation2 + $0x50] sm:$0xff] }
  0x6b   :  { %1583 = vmatpush3.bf16.msra.mxu0 %v1582_v21  ;;  %659 = vmatmul.mubr.f32.vlgmr.msra.gmra.mrb[2].mxu1 %v370_v22  ;;  %v1634_v21 = vpack.c.bf16 %v214_v15, %v213_v13  ;;  %v1604_v22 = vpack.c.bf16 %v200_v17, %v199_v16  ;;  %v269_v63 = vld [vmem:[#allocation5 + $0x710] sm:$0xff]  ;;  %v270_v1 = vld [vmem:[#allocation5 + $0x718] sm:$0xff]  ;;  %v256_v3 = vld [vmem:[#allocation5 + $0x6a8] sm:$0xff] }
  0x6c   :  { %1615 = vmatpush3.bf16.msra.mxu1 %v1614_v23  ;;  %1585 = vmatprep.subr.bf16.mxu0 %v1584_v24  ;;  %v183_v23 = vld [vmem:[#allocation5 + $0x460] sm:$0xff]  ;;  %v184_v24 = vld [vmem:[#allocation5 + $0x468] sm:$0xff]  ;;  %v257_v16 = vld [vmem:[#allocation5 + $0x6b0] sm:$0xff] }
  0x6d   :  { %1617 = vmatprep.subr.bf16.mxu1 %v1616_v28  ;;  %728 = vmatprep.mubr.f32.mxu0 %v373_v34  ;;  %v201_v28 = vld [vmem:[#allocation5 + $0x4f0] sm:$0xff]  ;;  %v1606_v32 = vpack.c.bf16 %v184_v24, %v183_v23  ;;  %v287_v4 = vld [vmem:[#allocation5 + $0x7a0] sm:$0xff]  ;;  %v288_v5 = vld [vmem:[#allocation5 + $0x7a8] sm:$0xff] }
  0x6e   :  { %798 = vmatprep.mubr.f32.mxu1 %v375_v36  ;;  %v1608_v34 = vpack.c.bf16 %v202_v29, %v201_v28  ;;  %v186_v36 = vld [vmem:[#allocation5 + $0x478] sm:$0xff]  ;;  %v377_v6 = vld [vmem:[#allocation2 + $0x68] sm:$0xff]  ;;  %v239_v11 = vld [vmem:[#allocation5 + $0x620] sm:$0xff] }
  0x6f   :  { %1587 = vmatpush3.bf16.msra.mxu0 %v1586_v35  ;;  %v185_v35 = vld [vmem:[#allocation5 + $0x470] sm:$0xff]  ;;  %v240_v12 = vld [vmem:[#allocation5 + $0x628] sm:$0xff]  ;;  %v271_v13 = vld [vmem:[#allocation5 + $0x720] sm:$0xff] }
  0x70   :  { %1619 = vmatpush3.bf16.msra.mxu1 %v1618_v37  ;;  %1589 = vmatprep.subr.bf16.mxu0 %v1588_v38  ;;  %v217_v37 = vld [vmem:[#allocation5 + $0x570] sm:$0xff]  ;;  %v1640_v38 = vpack.c.bf16 %v234_v31, %v233_v30  ;;  %v1610_v44 = vpack.c.bf16 %v186_v36, %v185_v35  ;;  %v272_v15 = vld [vmem:[#allocation5 + $0x728] sm:$0xff]  ;;  %v258_v17 = vld [vmem:[#allocation5 + $0x6b8] sm:$0xff] }
  0x71   :  { %1621 = vmatprep.subr.bf16.mxu1 %v1620_v42  ;;  %v283_v42 = vld [vmem:[#allocation5 + $0x780] sm:$0xff]  ;;  %v1642_v45 = vpack.c.bf16 %v218_v39, %v217_v37  ;;  %v289_v18 = vld [vmem:[#allocation5 + $0x7b0] sm:$0xff]  ;;  %v290_v19 = vld [vmem:[#allocation5 + $0x7b8] sm:$0xff] }
  0x72   :  { %v241_v23 = vld [vmem:[#allocation5 + $0x630] sm:$0xff]  ;;  %v242_v24 = vld [vmem:[#allocation5 + $0x638] sm:$0xff]  ;;  %v259_v28 = vld [vmem:[#allocation5 + $0x6c0] sm:$0xff] }
  0x73   :  { %1591 = vmatpush3.bf16.msra.mxu0 %v1590_v48  ;;  %v236_v48 = vld [vmem:[#allocation5 + $0x608] sm:$0xff]  ;;  %v273_v25 = vld [vmem:[#allocation5 + $0x730] sm:$0xff]  ;;  %v274_v27 = vld [vmem:[#allocation5 + $0x738] sm:$0xff] }
  0x74   :  { %1623 = vmatpush3.bf16.msra.mxu1 %v1622_v49  ;;  %1593 = vmatprep.subr.bf16.mxu0 %v1592_v50  ;;  %v267_v49 = vld [vmem:[#allocation5 + $0x700] sm:$0xff]  ;;  %v1676_v50 = vpack.c.bf16 %v284_v43, %v283_v42  ;;  %v1646_v57 = vpack.c.bf16 %v236_v48, %v235_v47  ;;  %v260_v29 = vld [vmem:[#allocation5 + $0x6c8] sm:$0xff]  ;;  %v261_v40 = vld [vmem:[#allocation5 + $0x6d0] sm:$0xff] }
  0x75   :  { %1625 = vmatprep.subr.bf16.mxu1 %v1624_v54  ;;  %v285_v54 = vld [vmem:[#allocation5 + $0x790] sm:$0xff]  ;;  %v1678_v59 = vpack.c.bf16 %v268_v51, %v267_v49  ;;  %v291_v30 = vld [vmem:[#allocation5 + $0x7c0] sm:$0xff]  ;;  %v292_v31 = vld [vmem:[#allocation5 + $0x7c8] sm:$0xff] }
  0x76   :  { %v1680_v0 = vpack.c.bf16 %v286_v55, %v285_v54  ;;  %v243_v35 = vld [vmem:[#allocation5 + $0x640] sm:$0xff]  ;;  %v244_v36 = vld [vmem:[#allocation5 + $0x648] sm:$0xff]  ;;  %v262_v41 = vld [vmem:[#allocation5 + $0x6d8] sm:$0xff] }
  0x77   :  { %1595 = vmatpush3.bf16.msra.mxu0 %v1594_v60  ;;  %v1648_v60 = vpack.c.bf16 %v254_v53, %v253_v52  ;;  %v275_v37 = vld [vmem:[#allocation5 + $0x740] sm:$0xff]  ;;  %v276_v39 = vld [vmem:[#allocation5 + $0x748] sm:$0xff]  ;;  %v293_v42 = vld [vmem:[#allocation5 + $0x7d0] sm:$0xff] }
  0x78   :  { %1627 = vmatpush3.bf16.msra.mxu1 %v1626_v61  ;;  %1597 = vmatprep.subr.bf16.mxu0 %v1596_v62  ;;  %v237_v61 = vld [vmem:[#allocation5 + $0x610] sm:$0xff]  ;;  %v238_v62 = vld [vmem:[#allocation5 + $0x618] sm:$0xff]  ;;  %v263_v52 = vld [vmem:[#allocation5 + $0x6e0] sm:$0xff] }
  0x79   :  { %1629 = vmatprep.subr.bf16.mxu1 %v1628_v2  ;;  %v255_v2 = vld [vmem:[#allocation5 + $0x6a0] sm:$0xff]  ;;  %v1650_v7 = vpack.c.bf16 %v238_v62, %v237_v61  ;;  %v294_v43 = vld [vmem:[#allocation5 + $0x7d8] sm:$0xff]  ;;  %v245_v47 = vld [vmem:[#allocation5 + $0x650] sm:$0xff] }
  0x7a   :  { %v246_v48 = vld [vmem:[#allocation5 + $0x658] sm:$0xff]  ;;  %v277_v49 = vld [vmem:[#allocation5 + $0x750] sm:$0xff]  ;;  %v264_v53 = vld [vmem:[#allocation5 + $0x6e8] sm:$0xff] }
  0x7b   :  { %1599 = vmatpush3.bf16.msra.mxu0 %v1598_v8  ;;  %v379_v8 = vld [vmem:[#allocation2 + $0x78] sm:$0xff]  ;;  %v295_v54 = vld [vmem:[#allocation5 + $0x7e0] sm:$0xff]  ;;  %v296_v55 = vld [vmem:[#allocation5 + $0x7e8] sm:$0xff] }
  0x7c   :  { %1631 = vmatpush3.bf16.msra.mxu1 %v1630_v9  ;;  %1601 = vmatprep.subr.bf16.mxu0 %v1600_v10  ;;  %v1682_v9 = vpack.c.bf16 %v270_v1, %v269_v63  ;;  %v1652_v10 = vpack.c.bf16 %v256_v3, %v255_v2  ;;  %v278_v51 = vld [vmem:[#allocation5 + $0x758] sm:$0xff]  ;;  %v279_v61 = vld [vmem:[#allocation5 + $0x760] sm:$0xff]  ;;  %v1700_v62 = vpack.c.bf16 %v296_v55, %v295_v54  ;;  %v280_v63 = vld [vmem:[#allocation5 + $0x768] sm:$0xff] }
  0x7d   :  { %1633 = vmatprep.subr.bf16.mxu1 %v1632_v14  ;;  %v1684_v14 = vpack.c.bf16 %v288_v5, %v287_v4  ;;  %v266_v1 = vld [vmem:[#allocation5 + $0x6f8] sm:$0xff]  ;;  %v297_v2 = vld [vmem:[#allocation5 + $0x7f0] sm:$0xff]  ;;  %v1702_v5 = vpack.c.bf16 %v280_v63, %v279_v61 }
  0x7e   :  { %v298_v3 = vld [vmem:[#allocation5 + $0x7f8] sm:$0xff]  ;;  %v353_v54 = vld [vmem:[#allocation5 + $0x9b0] sm:$0xff] }
  0x7f   :  { %1603 = vmatpush3.bf16.msra.mxu0 %v1602_v20  ;;  %v1654_v20 = vpack.c.bf16 %v240_v12, %v239_v11  ;;  %v282_v11 = vld [vmem:[#allocation5 + $0x778] sm:$0xff]  ;;  %v315_v12 = vld [vmem:[#allocation5 + $0x880] sm:$0xff]  ;;  %v337_v61 = vld [vmem:[#allocation5 + $0x930] sm:$0xff] }
  0x80   :  { %1635 = vmatpush3.bf16.msra.mxu1 %v1634_v21  ;;  %1605 = vmatprep.subr.bf16.mxu0 %v1604_v22  ;;  %v1686_v21 = vpack.c.bf16 %v272_v15, %v271_v13  ;;  %v1656_v22 = vpack.c.bf16 %v258_v17, %v257_v16  ;;  %v316_v13 = vld [vmem:[#allocation5 + $0x888] sm:$0xff]  ;;  %v354_v55 = vld [vmem:[#allocation5 + $0x9b8] sm:$0xff] }
  0x81   :  { %1637 = vmatprep.subr.bf16.mxu1 %v1636_v26  ;;  %v1688_v26 = vpack.c.bf16 %v290_v19, %v289_v18  ;;  %v348_v15 = vld [vmem:[#allocation5 + $0x988] sm:$0xff]  ;;  %v1708_v18 = vpack.c.bf16 %v316_v13, %v315_v12  ;;  %v299_v19 = vld [vmem:[#allocation5 + $0x800] sm:$0xff]  ;;  %v338_v63 = vld [vmem:[#allocation5 + $0x938] sm:$0xff] }
  0x82   :  { %v325_v12 = vld [vmem:[#allocation5 + $0x8d0] sm:$0xff]  ;;  %v326_v13 = vld [vmem:[#allocation5 + $0x8d8] sm:$0xff] }
  0x83   :  { %1607 = vmatpush3.bf16.msra.mxu0 %v1606_v32  ;;  %v1658_v32 = vpack.c.bf16 %v242_v24, %v241_v23  ;;  %v332_v23 = vld [vmem:[#allocation5 + $0x908] sm:$0xff]  ;;  %v317_v24 = vld [vmem:[#allocation5 + $0x890] sm:$0xff] }
  0x84   :  { %1639 = vmatpush3.bf16.msra.mxu1 %v1638_v33  ;;  %1609 = vmatprep.subr.bf16.mxu0 %v1608_v34  ;;  %v1690_v33 = vpack.c.bf16 %v274_v27, %v273_v25  ;;  %v1660_v34 = vpack.c.bf16 %v260_v29, %v259_v28  ;;  %v318_v25 = vld [vmem:[#allocation5 + $0x898] sm:$0xff]  ;;  %v376_v28 = vld [vmem:[#allocation2 + $0x60] sm:$0xff] }
  0x85   :  { %1641 = vmatprep.subr.bf16.mxu1 %v1640_v38  ;;  %v1692_v38 = vpack.c.bf16 %v292_v31, %v291_v30  ;;  %v350_v27 = vld [vmem:[#allocation5 + $0x998] sm:$0xff]  ;;  %v378_v30 = vld [vmem:[#allocation2 + $0x70] sm:$0xff] }
  0x87   :  { %1611 = vmatpush3.bf16.msra.mxu0 %v1610_v44  ;;  %v1662_v44 = vpack.c.bf16 %v244_v36, %v243_v35  ;;  %v333_v35 = vld [vmem:[#allocation5 + $0x910] sm:$0xff] }
  0x88   :  { %1643 = vmatpush3.bf16.msra.mxu1 %v1642_v45  ;;  %1645 = vmatprep.subr.bf16.mxu0 %v1644_v46  ;;  %v1694_v45 = vpack.c.bf16 %v276_v39, %v275_v37  ;;  %v1664_v46 = vpack.c.bf16 %v262_v41, %v261_v40  ;;  %v334_v37 = vld [vmem:[#allocation5 + $0x918] sm:$0xff]  ;;  %v320_v39 = vld [vmem:[#allocation5 + $0x8a8] sm:$0xff]  ;;  %v351_v40 = vld [vmem:[#allocation5 + $0x9a0] sm:$0xff] }
  0x89   :  { %1677 = vmatprep.subr.bf16.mxu1 %v1676_v50  ;;  %v1696_v50 = vpack.c.bf16 %v294_v43, %v293_v42  ;;  %v352_v41 = vld [vmem:[#allocation5 + $0x9a8] sm:$0xff] }
  0x8a   :  { %729 = vmatmul.mubr.f32.vlgmr.msra.gmra.mrb[4].mxu0 %v372_v56  ;;  %v1666_v56 = vpack.c.bf16 %v246_v48, %v245_v47  ;;  %v381_v42 = vld [vmem:[#allocation2 + $0x88] sm:$0xff]  ;;  %v303_v47 = vld [vmem:[#allocation5 + $0x820] sm:$0xff] }
  0x8b   :  { %1647 = vmatpush3.bf16.msra.mxu0 %v1646_v57  ;;  %799 = vmatmul.mubr.f32.vlgmr.msra.gmra.mrb[4].mxu1 %v374_v58  ;;  %v1698_v57 = vpack.c.bf16 %v278_v51, %v277_v49  ;;  %v1668_v58 = vpack.c.bf16 %v264_v53, %v263_v52  ;;  %v304_v48 = vld [vmem:[#allocation5 + $0x828] sm:$0xff]  ;;  %v335_v49 = vld [vmem:[#allocation5 + $0x920] sm:$0xff]  ;;  %v321_v52 = vld [vmem:[#allocation5 + $0x8b0] sm:$0xff] }
  0x8c   :  { %1679 = vmatpush3.bf16.msra.mxu1 %v1678_v59  ;;  %1649 = vmatprep.subr.bf16.mxu0 %v1648_v60  ;;  %v247_v59 = vld [vmem:[#allocation5 + $0x660] sm:$0xff]  ;;  %v248_v60 = vld [vmem:[#allocation5 + $0x668] sm:$0xff]  ;;  %v322_v53 = vld [vmem:[#allocation5 + $0x8b8] sm:$0xff] }
  0x8d   :  { %1681 = vmatprep.subr.bf16.mxu1 %v1680_v0  ;;  %868 = vmatprep.mubr.f32.mxu0 %v377_v6  ;;  %v265_v0 = vld [vmem:[#allocation5 + $0x6f0] sm:$0xff]  ;;  %v1670_v4 = vpack.c.bf16 %v248_v60, %v247_v59  ;;  %v336_v51 = vld [vmem:[#allocation5 + $0x928] sm:$0xff]  ;;  %v306_v60 = vld [vmem:[#allocation5 + $0x838] sm:$0xff] }
  0x8e   :  { %938 = vmatprep.mubr.f32.mxu1 %v379_v8  ;;  %v1672_v6 = vpack.c.bf16 %v266_v1, %v265_v0  ;;  %v250_v8 = vld [vmem:[#allocation5 + $0x678] sm:$0xff]  ;;  %v305_v59 = vld [vmem:[#allocation5 + $0x830] sm:$0xff]  ;;  %v323_v0 = vld [vmem:[#allocation5 + $0x8c0] sm:$0xff] }
  0x8f   :  { %1651 = vmatpush3.bf16.msra.mxu0 %v1650_v7  ;;  %v249_v7 = vld [vmem:[#allocation5 + $0x670] sm:$0xff]  ;;  %v324_v1 = vld [vmem:[#allocation5 + $0x8c8] sm:$0xff] }
  0x90   :  { %1683 = vmatpush3.bf16.msra.mxu1 %v1682_v9  ;;  %1653 = vmatprep.subr.bf16.mxu0 %v1652_v10  ;;  %v281_v9 = vld [vmem:[#allocation5 + $0x770] sm:$0xff]  ;;  %v1704_v10 = vpack.c.bf16 %v298_v3, %v297_v2  ;;  %v1674_v16 = vpack.c.bf16 %v250_v8, %v249_v7  ;;  %v355_v2 = vld [vmem:[#allocation5 + $0x9c0] sm:$0xff]  ;;  %v356_v3 = vld [vmem:[#allocation5 + $0x9c8] sm:$0xff] }
  0x91   :  { %1685 = vmatprep.subr.bf16.mxu1 %v1684_v14  ;;  %v347_v14 = vld [vmem:[#allocation5 + $0x980] sm:$0xff]  ;;  %v1706_v17 = vpack.c.bf16 %v282_v11, %v281_v9  ;;  %v308_v8 = vld [vmem:[#allocation5 + $0x848] sm:$0xff] }
  0x92   :  { %v307_v7 = vld [vmem:[#allocation5 + $0x840] sm:$0xff]  ;;  %v340_v11 = vld [vmem:[#allocation5 + $0x948] sm:$0xff] }
  0x93   :  { %1655 = vmatpush3.bf16.msra.mxu0 %v1654_v20  ;;  %v300_v20 = vld [vmem:[#allocation5 + $0x808] sm:$0xff]  ;;  %v339_v9 = vld [vmem:[#allocation5 + $0x940] sm:$0xff] }
  0x94   :  { %1687 = vmatpush3.bf16.msra.mxu1 %v1686_v21  ;;  %1657 = vmatprep.subr.bf16.mxu0 %v1656_v22  ;;  %v331_v21 = vld [vmem:[#allocation5 + $0x900] sm:$0xff]  ;;  %v1740_v22 = vpack.c.bf16 %v348_v15, %v347_v14  ;;  %v1710_v29 = vpack.c.bf16 %v300_v20, %v299_v19  ;;  %v357_v14 = vld [vmem:[#allocation5 + $0x9d0] sm:$0xff]  ;;  %v358_v15 = vld [vmem:[#allocation5 + $0x9d8] sm:$0xff] }
  0x95   :  { %1689 = vmatprep.subr.bf16.mxu1 %v1688_v26  ;;  %v349_v26 = vld [vmem:[#allocation5 + $0x990] sm:$0xff]  ;;  %v1742_v31 = vpack.c.bf16 %v332_v23, %v331_v21  ;;  %v310_v20 = vld [vmem:[#allocation5 + $0x858] sm:$0xff] }
  0x96   :  { %v1744_v36 = vpack.c.bf16 %v350_v27, %v349_v26  ;;  %v309_v19 = vld [vmem:[#allocation5 + $0x850] sm:$0xff]  ;;  %v342_v23 = vld [vmem:[#allocation5 + $0x958] sm:$0xff]  ;;  %v359_v26 = vld [vmem:[#allocation5 + $0x9e0] sm:$0xff] }
  0x97   :  { %1659 = vmatpush3.bf16.msra.mxu0 %v1658_v32  ;;  %v1712_v32 = vpack.c.bf16 %v318_v25, %v317_v24  ;;  %v341_v21 = vld [vmem:[#allocation5 + $0x950] sm:$0xff]  ;;  %v327_v24 = vld [vmem:[#allocation5 + $0x8e0] sm:$0xff]  ;;  %v328_v25 = vld [vmem:[#allocation5 + $0x8e8] sm:$0xff] }
  0x98   :  { %1691 = vmatpush3.bf16.msra.mxu1 %v1690_v33  ;;  %1661 = vmatprep.subr.bf16.mxu0 %v1660_v34  ;;  %v301_v33 = vld [vmem:[#allocation5 + $0x810] sm:$0xff]  ;;  %v302_v34 = vld [vmem:[#allocation5 + $0x818] sm:$0xff]  ;;  %v360_v27 = vld [vmem:[#allocation5 + $0x9e8] sm:$0xff] }
  0x99   :  { %1693 = vmatprep.subr.bf16.mxu1 %v1692_v38  ;;  %v319_v38 = vld [vmem:[#allocation5 + $0x8a0] sm:$0xff]  ;;  %v1714_v43 = vpack.c.bf16 %v302_v34, %v301_v33  ;;  %v1764_v34 = vpack.c.bf16 %v360_v27, %v359_v26 }
  0x9a   :  { %v343_v33 = vld [vmem:[#allocation5 + $0x960] sm:$0xff] }
  0x9b   :  { %1663 = vmatpush3.bf16.msra.mxu0 %v1662_v44  ;;  %v383_v44 = vld [vmem:[#allocation2 + $0x98] sm:$0xff] }
  0x9c   :  { %1695 = vmatpush3.bf16.msra.mxu1 %v1694_v45  ;;  %1665 = vmatprep.subr.bf16.mxu0 %v1664_v46  ;;  %v1746_v45 = vpack.c.bf16 %v334_v37, %v333_v35  ;;  %v1716_v46 = vpack.c.bf16 %v320_v39, %v319_v38  ;;  %v344_v35 = vld [vmem:[#allocation5 + $0x968] sm:$0xff]  ;;  %v330_v37 = vld [vmem:[#allocation5 + $0x8f8] sm:$0xff]  ;;  %v361_v38 = vld [vmem:[#allocation5 + $0x9f0] sm:$0xff] }
  0x9d   :  { %1697 = vmatprep.subr.bf16.mxu1 %v1696_v50  ;;  %v1748_v50 = vpack.c.bf16 %v352_v41, %v351_v40  ;;  %v362_v39 = vld [vmem:[#allocation5 + $0x9f8] sm:$0xff]  ;;  %v1766_v41 = vpack.c.bf16 %v344_v35, %v343_v33 }
  0x9f   :  { %1667 = vmatpush3.bf16.msra.mxu0 %v1666_v56  ;;  %v1718_v56 = vpack.c.bf16 %v304_v48, %v303_v47  ;;  %v346_v47 = vld [vmem:[#allocation5 + $0x978] sm:$0xff] }
  0xa0   :  { %1699 = vmatpush3.bf16.msra.mxu1 %v1698_v57  ;;  %1669 = vmatprep.subr.bf16.mxu0 %v1668_v58  ;;  %v1750_v57 = vpack.c.bf16 %v336_v51, %v335_v49  ;;  %v1720_v58 = vpack.c.bf16 %v322_v53, %v321_v52  ;;  %v382_v51 = vld [vmem:[#allocation2 + $0x90] sm:$0xff] }
  0xa1   :  { %1701 = vmatprep.subr.bf16.mxu1 %v1700_v62  ;;  %v1752_v62 = vpack.c.bf16 %v354_v55, %v353_v54 }
  0xa3   :  { %1671 = vmatpush3.bf16.msra.mxu0 %v1670_v4  ;;  %v1722_v4 = vpack.c.bf16 %v306_v60, %v305_v59 }
  0xa4   :  { %1703 = vmatpush3.bf16.msra.mxu1 %v1702_v5  ;;  %1673 = vmatprep.subr.bf16.mxu0 %v1672_v6  ;;  %v1754_v5 = vpack.c.bf16 %v338_v63, %v337_v61  ;;  %v1724_v6 = vpack.c.bf16 %v324_v1, %v323_v0 }
  0xa5   :  { %1705 = vmatprep.subr.bf16.mxu1 %v1704_v10  ;;  %v1756_v10 = vpack.c.bf16 %v356_v3, %v355_v2 }
  0xa7   :  { %1675 = vmatpush3.bf16.msra.mxu0 %v1674_v16  ;;  %v1726_v16 = vpack.c.bf16 %v308_v8, %v307_v7 }
  0xa8   :  { %1707 = vmatpush3.bf16.msra.mxu1 %v1706_v17  ;;  %1709 = vmatprep.subr.bf16.mxu0 %v1708_v18  ;;  %v1758_v17 = vpack.c.bf16 %v340_v11, %v339_v9  ;;  %v1728_v18 = vpack.c.bf16 %v326_v13, %v325_v12 }
  0xa9   :  { %1741 = vmatprep.subr.bf16.mxu1 %v1740_v22  ;;  %v1760_v22 = vpack.c.bf16 %v358_v15, %v357_v14 }
  0xaa   :  { %869 = vmatmul.mubr.f32.vlgmr.msra.gmra.mrb[6].mxu0 %v376_v28  ;;  %v1730_v28 = vpack.c.bf16 %v310_v20, %v309_v19 }
  0xab   :  { %1711 = vmatpush3.bf16.msra.mxu0 %v1710_v29  ;;  %939 = vmatmul.mubr.f32.vlgmr.msra.gmra.mrb[6].mxu1 %v378_v30  ;;  %v1762_v29 = vpack.c.bf16 %v342_v23, %v341_v21  ;;  %v1732_v30 = vpack.c.bf16 %v328_v25, %v327_v24 }
  0xac   :  { %1743 = vmatpush3.bf16.msra.mxu1 %v1742_v31  ;;  %1713 = vmatprep.subr.bf16.mxu0 %v1712_v32  ;;  %v311_v31 = vld [vmem:[#allocation5 + $0x860] sm:$0xff]  ;;  %v312_v32 = vld [vmem:[#allocation5 + $0x868] sm:$0xff] }
  0xad   :  { %1745 = vmatprep.subr.bf16.mxu1 %v1744_v36  ;;  %1008 = vmatprep.mubr.f32.mxu0 %v381_v42  ;;  %v329_v36 = vld [vmem:[#allocation5 + $0x8f0] sm:$0xff]  ;;  %v1734_v40 = vpack.c.bf16 %v312_v32, %v311_v31 }
  0xae   :  { %1078 = vmatprep.mubr.f32.mxu1 %v383_v44  ;;  %v1736_v42 = vpack.c.bf16 %v330_v37, %v329_v36  ;;  %v314_v44 = vld [vmem:[#allocation5 + $0x878] sm:$0xff] }
  0xaf   :  { %1715 = vmatpush3.bf16.msra.mxu0 %v1714_v43  ;;  %v313_v43 = vld [vmem:[#allocation5 + $0x870] sm:$0xff] }
  0xb0   :  { %1747 = vmatpush3.bf16.msra.mxu1 %v1746_v45  ;;  %1717 = vmatprep.subr.bf16.mxu0 %v1716_v46  ;;  %v1768_v45 = vpack.c.bf16 %v362_v39, %v361_v38  ;;  %v345_v46 = vld [vmem:[#allocation5 + $0x970] sm:$0xff]  ;;  %v1738_v48 = vpack.c.bf16 %v314_v44, %v313_v43 }
  0xb1   :  { %1749 = vmatprep.subr.bf16.mxu1 %v1748_v50  ;;  %v1770_v49 = vpack.c.bf16 %v346_v47, %v345_v46  ;;  %v380_v50 = vld [vmem:[#allocation2 + $0x80] sm:$0xff] }
  0xb3   :  { %1719 = vmatpush3.bf16.msra.mxu0 %v1718_v56 }
  0xb4   :  { %1751 = vmatpush3.bf16.msra.mxu1 %v1750_v57  ;;  %1721 = vmatprep.subr.bf16.mxu0 %v1720_v58 }
  0xb5   :  { %1753 = vmatprep.subr.bf16.mxu1 %v1752_v62 }
  0xb7   :  { %1723 = vmatpush3.bf16.msra.mxu0 %v1722_v4 }
  0xb8   :  { %1755 = vmatpush3.bf16.msra.mxu1 %v1754_v5  ;;  %1725 = vmatprep.subr.bf16.mxu0 %v1724_v6 }
  0xb9   :  { %1757 = vmatprep.subr.bf16.mxu1 %v1756_v10 }
  0xbb   :  { %1727 = vmatpush3.bf16.msra.mxu0 %v1726_v16 }
  0xbc   :  { %1759 = vmatpush3.bf16.msra.mxu1 %v1758_v17  ;;  %1729 = vmatprep.subr.bf16.mxu0 %v1728_v18 }
  0xbd   :  { %1761 = vmatprep.subr.bf16.mxu1 %v1760_v22 }
  0xbf   :  { %1731 = vmatpush3.bf16.msra.mxu0 %v1730_v28 }
  0xc0   :  { %1763 = vmatpush3.bf16.msra.mxu1 %v1762_v29  ;;  %1733 = vmatprep.subr.bf16.mxu0 %v1732_v30 }
  0xc1   :  { %1765 = vmatprep.subr.bf16.mxu1 %v1764_v34 }
  0xc3   :  { %1735 = vmatpush3.bf16.msra.mxu0 %v1734_v40 }
  0xc4   :  { %1767 = vmatpush3.bf16.msra.mxu1 %v1766_v41  ;;  %1737 = vmatprep.subr.bf16.mxu0 %v1736_v42 }
  0xc5   :  { %1769 = vmatprep.subr.bf16.mxu1 %v1768_v45 }
  0xc7   :  { %1739 = vmatpush3.bf16.msra.mxu0 %v1738_v48 }
  0xc8   :  { %1771 = vmatpush3.bf16.msra.mxu1 %v1770_v49 }
  0xca   :  { %1009 = vmatmul.mubr.f32.vlgmr.msra.gmra.mrb[8].mxu0 %v380_v50 }
  0xcb   :  { %1079 = vmatmul.mubr.f32.vlgmr.msra.gmra.mrb[8].mxu1 %v382_v51 }
 0x11d   :  { %v1134_v52 = vpop.f32.mrb[0].mxu0 }
 0x11e   :  { %v1169_v53 = vpop.f32.mrb[0].mxu1  ;;  %v1135_v54 = vpop.f32.mrb[1].mxu0 }
 0x11f   :  { %v1136_v55 = vadd.f32 %v1135_v54, %v1134_v52  ;;  %v1170_v56 = vpop.f32.mrb[1].mxu1 }
 0x120   :  { %v1171_v57 = vadd.f32 %v1170_v56, %v1169_v53 }
 0x122   :  { %v521_v58 = vadd.f32 %v1171_v57, %v1136_v55 }
 0x13d   :  { %v1204_v59 = vpop.f32.mrb[2].mxu0 }
 0x13e   :  { %v1205_v60 = vpop.f32.mrb[3].mxu0  ;;  %v1239_v61 = vpop.f32.mrb[2].mxu1 }
 0x13f   :  { %v1206_v62 = vadd.f32 %v1205_v60, %v1204_v59  ;;  %v1240_v63 = vpop.f32.mrb[3].mxu1 }
 0x140   :  { %v1241_v0 = vadd.f32 %v1240_v63, %v1239_v61 }
 0x141   :  { %v591_v1 = vadd.f32 %v1206_v62, %v521_v58 }
 0x143   :  { %v661_v2 = vadd.f32 %v1241_v0, %v591_v1 }
 0x15d   :  { %v1274_v3 = vpop.f32.mrb[4].mxu0 }
 0x15e   :  { %v1275_v4 = vpop.f32.mrb[5].mxu0  ;;  %v1309_v5 = vpop.f32.mrb[4].mxu1 }
 0x15f   :  { %v1276_v6 = vadd.f32 %v1275_v4, %v1274_v3  ;;  %v1310_v7 = vpop.f32.mrb[5].mxu1 }
 0x160   :  { %v1311_v8 = vadd.f32 %v1310_v7, %v1309_v5 }
 0x161   :  { %v731_v9 = vadd.f32 %v1276_v6, %v661_v2 }
 0x163   :  { %v801_v10 = vadd.f32 %v1311_v8, %v731_v9 }
 0x17d   :  { %v1344_v11 = vpop.f32.mrb[6].mxu0 }
 0x17e   :  { %v1345_v12 = vpop.f32.mrb[7].mxu0  ;;  %v1379_v13 = vpop.f32.mrb[6].mxu1 }
 0x17f   :  { %v1346_v14 = vadd.f32 %v1345_v12, %v1344_v11  ;;  %v1380_v15 = vpop.f32.mrb[7].mxu1 }
 0x180   :  { %v1381_v16 = vadd.f32 %v1380_v15, %v1379_v13 }
 0x181   :  { %v871_v17 = vadd.f32 %v1346_v14, %v801_v10 }
 0x183   :  { %v941_v18 = vadd.f32 %v1381_v16, %v871_v17 }
 0x19d   :  { %v1414_v19 = vpop.f32.mrb[8].mxu0 }
 0x19e   :  { %v1415_v20 = vpop.f32.mrb[9].mxu0  ;;  %v1449_v21 = vpop.f32.mrb[8].mxu1 }
 0x19f   :  { %v1416_v22 = vadd.f32 %v1415_v20, %v1414_v19  ;;  %v1450_v23 = vpop.f32.mrb[9].mxu1 }
 0x1a0   :  { %v1451_v24 = vadd.f32 %v1450_v23, %v1449_v21 }
 0x1a1   :  { %v1011_v25 = vadd.f32 %v1416_v22, %v941_v18 }
 0x1a3   :  { %v1081_v26 = vadd.f32 %v1451_v24, %v1011_v25 }
 0x1a5   :  { %1085 = vst [vmem:[#allocation7] sm:$0xff] %v1081_v26 }
 0x1a6   :  { %1833 = shalt.err (!%p1830_p6)
}
 0x1a7   :  { %s1834_s10 = scalar_lea.hbm %s1915_s2, 128 }
 0x1a8   :  { %p1835_p7 = scmp.ne.s32.totalorder %s1915_s2, %s1834_s10  ;;  %p1838_p8 = scmp.lt.u32.totalorder %s1834_s10, %s1915_s2 }
 0x1aa   :  { %p1840_p9 = pnand %p1838_p8, %p1835_p7 }
 0x1ac   :  { %1843 = shalt.err (!%p1840_p9)
}
 0x1ad   :  { %1095 = dma.vmem_to_hbm [thread:$0]  %s1093_s6, 128, %s1915_s2, [#allocation4]  }
 0x1ae   :  { %1848 = dma.done.wait [#allocation4], 128  }
 0x1af   :  { %1849 = vsyncadd [#allocation4], 4294967168 }
 0x1b0   :  { %1099 = vsyncpa [#allocation3], 1 }
 0x1b1   :  { %1100 = vsyncpa [#allocation6], 1 }
 0x1b2   :  { %1101 = vsyncpa [#allocation4], 1 }

</bundles_post_ra>
